<compile_context>
chip_gen: v6e
topology: v6e:2x2x1
jax: 0.10.0
libtpu: 0.0.40
codegen_flags: <defaults>
</compile_context>

<pallas_src>
import jax
import jax.numpy as jnp
from jax.experimental import pallas as pl
from jax.experimental.pallas import tpu as pltpu


def _round_up(x, m):
    return ((x + m - 1) // m) * m


# ----------------------------- fused Pallas kernel ---------------------------

def make_fused_dsu_kernel(nlayers, H, Gp):
    """Builds the fused kernel. All layers are unrolled inside one kernel body.

    Ref order: x, h0_pad, c0_pad, w1_bd, b1, w2_pack, b2_pack,
               [wih_l, whh_l, b_l for l in 1..nlayers-1], hy_pad, cy_pad
    """
    n_in = 7 + 3 * (nlayers - 1)

    def kernel(*refs):
        x_ref, h0_ref, c0_ref, w1_ref, b1_ref, w2_ref, b2_ref = refs[:7]
        layer_refs = refs[7:n_in]
        hy_ref, cy_ref = refs[n_in], refs[n_in + 1]

        carry = x_ref[...].astype(jnp.float32)        # (B, input_size) for layer 0

        for l in range(nlayers):
            cx = c0_ref[l]                             # (B, Gp), zero-padded

            if l == 0:
                # Merged dsu_cell(x) + dsu_cell(hx):
                #  stage 1: one block-diagonal matmul -> [h_ih | h_hh], then ReLU
                hx = h0_ref[l]                         # (B, Gp), zero-padded
                xcat = jnp.concatenate([carry, hx], axis=-1)
                h1 = jnp.maximum(
                    jnp.dot(xcat, w1_ref[...],
                            preferred_element_type=jnp.float32) + b1_ref[...],
                    0.0)
                #  stage 2: one stacked-K matmul, biases pre-folded, gate cols
                #  padded to 3*Gp lanes.
                gates = (jnp.dot(h1, w2_ref[...],
                                 preferred_element_type=jnp.float32) + b2_ref[...])
            else:
                # Compact-K path: dot only the H valid lanes of carry / hx with
                # (H, 3*Gp) weights, add on the VPU.  No K zero-padding, no
                # in-kernel concatenate -> ~4x fewer weight bytes from HBM.
                wih_ref, whh_ref, bp_ref = layer_refs[3 * (l - 1):3 * l]
                hx_v = h0_ref[l][:, :H]                # (B, H) valid lanes
                gates = (jnp.dot(carry[:, :H], wih_ref[...],
                                 preferred_element_type=jnp.float32)
                         + jnp.dot(hx_v, whh_ref[...],
                                   preferred_element_type=jnp.float32)
                         + bp_ref[...])

            # Gate slices are 128-lane aligned (Gp is a multiple of 128).
            i_g = jax.nn.sigmoid(gates[:, 0 * Gp:1 * Gp])
            f_g = jax.nn.sigmoid(gates[:, 1 * Gp:2 * Gp])
            c_g = jnp.tanh(gates[:, 2 * Gp:3 * Gp])
            ncx = f_g * cx + i_g * c_g
            nhx = jax.nn.sigmoid(ncx)

            # Lane-dense, unmasked (B, Gp) stores directly into the stacked outputs.
            hy_ref[l] = nhx.astype(hy_ref.dtype)
            cy_ref[l] = ncx.astype(cy_ref.dtype)

            # TODO(synk): nn.Dropout treated as eval-mode identity (no random mask).
            carry = nhx

    return kernel


# ------------------------- host-side weight packing --------------------------

def pack_params(layer_params, input_size, H, Gp, nlayers):
    """Fold biases, pad gate columns to Gp lanes; keep layer>0 weights compact in K."""
    p0 = layer_params[0]
    d1i = input_size // 16
    d1h = H // 16
    d1 = d1i + d1h

    # Layer 0, stage 1: block-diagonal over concat([x, hx_pad]).
    w1 = jnp.zeros((input_size + Gp, d1), jnp.float32)
    w1 = w1.at[:input_size, :d1i].set(p0["wih1"])
    w1 = w1.at[input_size:input_size + H, d1i:].set(p0["whh1"])
    b1 = jnp.concatenate([p0["bih1"], p0["bhh1"]], axis=-1)        # (1, d1)

    def pad_cols_w(w):
        out = jnp.zeros((w.shape[0], 3 * Gp), jnp.float32)
        for g in range(3):
            out = out.at[:, g * Gp:g * Gp + H].set(w[:, g * H:(g + 1) * H])
        return out

    def pad_cols_b(b):
        out = jnp.zeros((1, 3 * Gp), jnp.float32)
        for g in range(3):
            out = out.at[:, g * Gp:g * Gp + H].set(b[:, g * H:(g + 1) * H])
        return out

    # Layer 0, stage 2: stack W2_ih / W2_hh along K, fold biases, pad gate cols.
    w2 = pad_cols_w(jnp.concatenate([p0["wih2"], p0["whh2"]], axis=0))
    b2 = pad_cols_b(p0["bih2"] + p0["bhh2"])

    packed = [w1, b1, w2, b2]

    # Layers > 0: compact-K (H, 3*Gp) weights per source + folded padded bias.
    for l in range(1, nlayers):
        p = layer_params[l]
        packed += [pad_cols_w(p["wih"]), pad_cols_w(p["whh"]),
                   pad_cols_b(p["bih"] + p["bhh"])]
    return packed


# --------------------------------- wrapper -----------------------------------

def dsu_block_forward(x, hidden, layer_params):
    """Matches DSU_block.forward. hidden = (h0, c0), each (nlayers, B, H)."""
    h0, c0 = hidden
    nlayers, B, H = h0.shape
    input_size = x.shape[-1]
    Gp = _round_up(H, 128)          # gate/state segment padded to lane width

    packed = pack_params(layer_params, input_size, H, Gp, nlayers)
    pad = ((0, 0), (0, 0), (0, Gp - H))
    h0p = jnp.pad(h0.astype(jnp.float32), pad)
    c0p = jnp.pad(c0.astype(jnp.float32), pad)

    args = (x, h0p, c0p, *packed)
    n_args = len(args)

    d1 = input_size // 16 + H // 16
    flops = (2 * B * (input_size + Gp) * d1              # layer-0 stage 1
             + 2 * B * d1 * 3 * Gp                       # layer-0 stage 2
             + (nlayers - 1) * 4 * B * H * 3 * Gp        # two dots per extra layer
             + nlayers * B * Gp * 6)                     # gate/state elementwise
    transcendentals = nlayers * B * Gp * 4
    bytes_accessed = 4 * (x.size + h0p.size + c0p.size
                          + sum(int(w.size) for w in packed)
                          + 2 * nlayers * B * Gp)

    kernel = make_fused_dsu_kernel(nlayers, H, Gp)
    vmem = pl.BlockSpec(memory_space=pltpu.MemorySpace.VMEM)

    hy_p, cy_p = pl.pallas_call(
        kernel,
        out_shape=(jax.ShapeDtypeStruct((nlayers, B, Gp), jnp.float32),
                   jax.ShapeDtypeStruct((nlayers, B, Gp), jnp.float32)),
        in_specs=[vmem] * n_args,
        out_specs=(vmem, vmem),
        cost_estimate=pl.CostEstimate(flops=flops,
                                      transcendentals=transcendentals,
                                      bytes_accessed=bytes_accessed),
    )(*args)

    # Slice off lane padding (pure layout plumbing in the wrapper).
    return hy_p[:, :, :H], cy_p[:, :, :H]


# --------------------------- reference (plain JAX) ---------------------------

def ref_forward(x, hidden, layer_params):
    h0, c0 = hidden
    hy, cy = [], []
    inp = x
    for i, p in enumerate(layer_params):
        hx, cx = h0[i], c0[i]
        H = hx.shape[-1]
        if i == 0:
            g_ih = jnp.maximum(inp @ p["wih1"] + p["bih1"], 0.0) @ p["wih2"] + p["bih2"]
            g_hh = jnp.maximum(hx @ p["whh1"] + p["bhh1"], 0.0) @ p["whh2"] + p["bhh2"]
        else:
            g_ih = inp @ p["wih"] + p["bih"]
            g_hh = hx @ p["whh"] + p["bhh"]
        gates = g_ih + g_hh
        i_g = jax.nn.sigmoid(gates[:, :H])
        f_g = jax.nn.sigmoid(gates[:, H:2 * H])
        c_g = jnp.tanh(gates[:, 2 * H:])
        ncx = f_g * cx + i_g * c_g
        nhx = jax.nn.sigmoid(ncx)
        hy.append(nhx)
        cy.append(ncx)
        inp = nhx
    return jnp.stack(hy, 0), jnp.stack(cy, 0)


# ------------------------------ param init -----------------------------------

def init_params(key, input_size, hidden_size, nlayers):
    H3 = 3 * hidden_size
    params = []
    for i in range(nlayers):
        if i == 0:
            k = jax.random.split(key, 9)
            key = k[0]
            p = {
                # dsu_cell(input_size, hidden_size): weights stored as (in, out)
                "wih1": jax.random.normal(k[1], (input_size, input_size // 16), jnp.float32) * 0.1,
                "bih1": jax.random.normal(k[2], (1, input_size // 16), jnp.float32) * 0.1,
                "wih2": jax.random.normal(k[3], (input_size // 16, H3), jnp.float32) * 0.1,
                "bih2": jax.random.normal(k[4], (1, H3), jnp.float32) * 0.1,
                # dsu_cell(hidden_size, hidden_size)
                "whh1": jax.random.normal(k[5], (hidden_size, hidden_size // 16), jnp.float32) * 0.1,
                "bhh1": jax.random.normal(k[6], (1, hidden_size // 16), jnp.float32) * 0.1,
                "whh2": jax.random.normal(k[7], (hidden_size // 16, H3), jnp.float32) * 0.1,
                "bhh2": jax.random.normal(k[8], (1, H3), jnp.float32) * 0.1,
            }
        else:
            k = jax.random.split(key, 5)
            key = k[0]
            p = {
                "wih": jax.random.normal(k[1], (hidden_size, H3), jnp.float32) * 0.1,
                "bih": jax.random.normal(k[2], (1, H3), jnp.float32) * 0.1,
                "whh": jax.random.normal(k[3], (hidden_size, H3), jnp.float32) * 0.1,
                "bhh": jax.random.normal(k[4], (1, H3), jnp.float32) * 0.1,
            }
        params.append(p)
    return params


# --------------------------------- main ---------------------------------------

if __name__ == "__main__":
    INPUT_SIZE = 128     # must be >= 16 so input_size // 16 >= 1
    HIDDEN_SIZE = 32
    NLAYERS = 2
    BATCH = 8

    key = jax.random.PRNGKey(0)
    kx, kh, kc, kp = jax.random.split(key, 4)

    x = jax.random.normal(kx, (BATCH, INPUT_SIZE), jnp.float32)
    h0 = jax.random.normal(kh, (NLAYERS, BATCH, HIDDEN_SIZE), jnp.float32)
    c0 = jax.random.normal(kc, (NLAYERS, BATCH, HIDDEN_SIZE), jnp.float32)
    params = init_params(kp, INPUT_SIZE, HIDDEN_SIZE, NLAYERS)

    fwd = jax.jit(dsu_block_forward)
    hy, cy = fwd(x, (h0, c0), params)
    hy, cy = jax.block_until_ready((hy, cy))

    hy_ref, cy_ref = ref_forward(x, (h0, c0), params)
    assert hy.shape == (NLAYERS, BATCH, HIDDEN_SIZE)
    assert cy.shape == (NLAYERS, BATCH, HIDDEN_SIZE)
    assert jnp.allclose(hy, hy_ref, atol=1e-5, rtol=1e-5)
    assert jnp.allclose(cy, cy_ref, atol=1e-5, rtol=1e-5)

    print("KERNEL_OK")
</pallas_src>

<mosaic_0001>
module attributes {stable_mosaic.version = 11 : i64} {
  func.func @kernel(%arg0: memref<8x128xf32, #tpu.memory_space<vmem>>, %arg1: memref<2x8x128xf32, #tpu.memory_space<vmem>>, %arg2: memref<2x8x128xf32, #tpu.memory_space<vmem>>, %arg3: memref<256x10xf32, #tpu.memory_space<vmem>>, %arg4: memref<1x10xf32, #tpu.memory_space<vmem>>, %arg5: memref<10x384xf32, #tpu.memory_space<vmem>>, %arg6: memref<1x384xf32, #tpu.memory_space<vmem>>, %arg7: memref<32x384xf32, #tpu.memory_space<vmem>>, %arg8: memref<32x384xf32, #tpu.memory_space<vmem>>, %arg9: memref<1x384xf32, #tpu.memory_space<vmem>>, %arg10: memref<2x8x128xf32, #tpu.memory_space<vmem>>, %arg11: memref<2x8x128xf32, #tpu.memory_space<vmem>>) attributes {dimension_semantics = [], scalar_prefetch = 0 : i64, scratch_operands = 0 : i64, tpu.core_type = #tpu.core_type<tc>} {
    %c0 = arith.constant 0 : index
    %c0_0 = arith.constant 0 : index
    %0 = vector.load %arg0[%c0, %c0_0] : memref<8x128xf32, #tpu.memory_space<vmem>>, vector<8x128xf32>
    %c0_1 = arith.constant 0 : index
    %c0_2 = arith.constant 0 : index
    %c0_3 = arith.constant 0 : index
    %1 = vector.load %arg2[%c0_1, %c0_2, %c0_3] : memref<2x8x128xf32, #tpu.memory_space<vmem>>, vector<1x8x128xf32>
    %2 = vector.shape_cast %1 : vector<1x8x128xf32> to vector<8x128xf32>
    %c0_4 = arith.constant 0 : index
    %c0_5 = arith.constant 0 : index
    %c0_6 = arith.constant 0 : index
    %3 = vector.load %arg1[%c0_4, %c0_5, %c0_6] : memref<2x8x128xf32, #tpu.memory_space<vmem>>, vector<1x8x128xf32>
    %4 = vector.shape_cast %3 : vector<1x8x128xf32> to vector<8x128xf32>
    %5 = tpu.concatenate %0, %4 in 1 : vector<8x128xf32>, vector<8x128xf32> -> vector<8x256xf32>
    %c0_7 = arith.constant 0 : index
    %c0_8 = arith.constant 0 : index
    %6 = vector.load %arg3[%c0_7, %c0_8] : memref<256x10xf32, #tpu.memory_space<vmem>>, vector<256x10xf32>
    %cst = arith.constant dense<0.000000e+00> : vector<8x10xf32>
    %7 = tpu.matmul %5, %6, %cst {dimension_numbers = #tpu.dot_dimension_numbers<[1], [0], [0], [1], [0, 0, 1, 1], [], []>} : vector<8x256xf32>, vector<256x10xf32>, vector<8x10xf32> -> vector<8x10xf32>
    %c0_9 = arith.constant 0 : index
    %c0_10 = arith.constant 0 : index
    %8 = vector.load %arg4[%c0_9, %c0_10] : memref<1x10xf32, #tpu.memory_space<vmem>>, vector<1x10xf32>
    %9 = vector.broadcast %8 : vector<1x10xf32> to vector<8x10xf32>
    %10 = arith.addf %7, %9 : vector<8x10xf32>
    %cst_11 = arith.constant 0.000000e+00 : f32
    %11 = vector.broadcast %cst_11 : f32 to vector<8x10xf32>
    %12 = arith.maximumf %10, %11 : vector<8x10xf32>
    %c0_12 = arith.constant 0 : index
    %c0_13 = arith.constant 0 : index
    %13 = vector.load %arg5[%c0_12, %c0_13] : memref<10x384xf32, #tpu.memory_space<vmem>>, vector<10x384xf32>
    %cst_14 = arith.constant dense<0.000000e+00> : vector<8x384xf32>
    %14 = tpu.matmul %12, %13, %cst_14 {dimension_numbers = #tpu.dot_dimension_numbers<[1], [0], [0], [1], [0, 0, 1, 1], [], []>} : vector<8x10xf32>, vector<10x384xf32>, vector<8x384xf32> -> vector<8x384xf32>
    %c0_15 = arith.constant 0 : index
    %c0_16 = arith.constant 0 : index
    %15 = vector.load %arg6[%c0_15, %c0_16] : memref<1x384xf32, #tpu.memory_space<vmem>>, vector<1x384xf32>
    %16 = vector.broadcast %15 : vector<1x384xf32> to vector<8x384xf32>
    %17 = arith.addf %14, %16 : vector<8x384xf32>
    %18 = vector.extract_strided_slice %17 {offsets = [0, 0], sizes = [8, 128], strides = [1, 1]} : vector<8x384xf32> to vector<8x128xf32>
    %19 = arith.negf %18 : vector<8x128xf32>
    %20 = math.exp %19 : vector<8x128xf32>
    %cst_17 = arith.constant 1.000000e+00 : f32
    %21 = vector.broadcast %cst_17 : f32 to vector<8x128xf32>
    %22 = arith.addf %21, %20 : vector<8x128xf32>
    %23 = arith.divf %21, %22 : vector<8x128xf32>
    %24 = vector.extract_strided_slice %17 {offsets = [0, 128], sizes = [8, 128], strides = [1, 1]} : vector<8x384xf32> to vector<8x128xf32>
    %25 = arith.negf %24 : vector<8x128xf32>
    %26 = math.exp %25 : vector<8x128xf32>
    %cst_18 = arith.constant 1.000000e+00 : f32
    %27 = vector.broadcast %cst_18 : f32 to vector<8x128xf32>
    %28 = arith.addf %27, %26 : vector<8x128xf32>
    %29 = arith.divf %27, %28 : vector<8x128xf32>
    %30 = vector.extract_strided_slice %17 {offsets = [0, 256], sizes = [8, 128], strides = [1, 1]} : vector<8x384xf32> to vector<8x128xf32>
    %31 = math.tanh %30 : vector<8x128xf32>
    %32 = arith.mulf %29, %2 : vector<8x128xf32>
    %33 = arith.mulf %23, %31 : vector<8x128xf32>
    %34 = arith.addf %32, %33 : vector<8x128xf32>
    %35 = arith.negf %34 : vector<8x128xf32>
    %36 = math.exp %35 : vector<8x128xf32>
    %cst_19 = arith.constant 1.000000e+00 : f32
    %37 = vector.broadcast %cst_19 : f32 to vector<8x128xf32>
    %38 = arith.addf %37, %36 : vector<8x128xf32>
    %39 = arith.divf %37, %38 : vector<8x128xf32>
    %c0_20 = arith.constant 0 : index
    %c0_21 = arith.constant 0 : index
    %c0_22 = arith.constant 0 : index
    %40 = vector.load %arg10[%c0_20, %c0_21, %c0_22] : memref<2x8x128xf32, #tpu.memory_space<vmem>>, vector<1x8x128xf32>
    %41 = vector.shape_cast %40 : vector<1x8x128xf32> to vector<8x128xf32>
    %42 = vector.shape_cast %39 : vector<8x128xf32> to vector<1x8x128xf32>
    tpu.vector_store %arg10[%c0_20, %c0_21, %c0_22], %42 {strides = array<i32>} : memref<2x8x128xf32, #tpu.memory_space<vmem>>, vector<1x8x128xf32>,
    %c0_23 = arith.constant 0 : index
    %c0_24 = arith.constant 0 : index
    %c0_25 = arith.constant 0 : index
    %43 = vector.load %arg11[%c0_23, %c0_24, %c0_25] : memref<2x8x128xf32, #tpu.memory_space<vmem>>, vector<1x8x128xf32>
    %44 = vector.shape_cast %43 : vector<1x8x128xf32> to vector<8x128xf32>
    %45 = vector.shape_cast %34 : vector<8x128xf32> to vector<1x8x128xf32>
    tpu.vector_store %arg11[%c0_23, %c0_24, %c0_25], %45 {strides = array<i32>} : memref<2x8x128xf32, #tpu.memory_space<vmem>>, vector<1x8x128xf32>,
    %c1 = arith.constant 1 : index
    %c0_26 = arith.constant 0 : index
    %c0_27 = arith.constant 0 : index
    %46 = vector.load %arg2[%c1, %c0_26, %c0_27] : memref<2x8x128xf32, #tpu.memory_space<vmem>>, vector<1x8x128xf32>
    %47 = vector.shape_cast %46 : vector<1x8x128xf32> to vector<8x128xf32>
    %c1_28 = arith.constant 1 : index
    %c0_29 = arith.constant 0 : index
    %c0_30 = arith.constant 0 : index
    %48 = vector.load %arg1[%c1_28, %c0_29, %c0_30] : memref<2x8x128xf32, #tpu.memory_space<vmem>>, vector<1x8x128xf32>
    %49 = vector.shape_cast %48 : vector<1x8x128xf32> to vector<8x128xf32>
    %50 = vector.extract_strided_slice %49 {offsets = [0, 0], sizes = [8, 32], strides = [1, 1]} : vector<8x128xf32> to vector<8x32xf32>
    %51 = vector.extract_strided_slice %39 {offsets = [0, 0], sizes = [8, 32], strides = [1, 1]} : vector<8x128xf32> to vector<8x32xf32>
    %c0_31 = arith.constant 0 : index
    %c0_32 = arith.constant 0 : index
    %52 = vector.load %arg7[%c0_31, %c0_32] : memref<32x384xf32, #tpu.memory_space<vmem>>, vector<32x384xf32>
    %cst_33 = arith.constant dense<0.000000e+00> : vector<8x384xf32>
    %53 = tpu.matmul %51, %52, %cst_33 {dimension_numbers = #tpu.dot_dimension_numbers<[1], [0], [0], [1], [0, 0, 1, 1], [], []>} : vector<8x32xf32>, vector<32x384xf32>, vector<8x384xf32> -> vector<8x384xf32>
    %c0_34 = arith.constant 0 : index
    %c0_35 = arith.constant 0 : index
    %54 = vector.load %arg8[%c0_34, %c0_35] : memref<32x384xf32, #tpu.memory_space<vmem>>, vector<32x384xf32>
    %cst_36 = arith.constant dense<0.000000e+00> : vector<8x384xf32>
    %55 = tpu.matmul %50, %54, %cst_36 {dimension_numbers = #tpu.dot_dimension_numbers<[1], [0], [0], [1], [0, 0, 1, 1], [], []>} : vector<8x32xf32>, vector<32x384xf32>, vector<8x384xf32> -> vector<8x384xf32>
    %56 = arith.addf %53, %55 : vector<8x384xf32>
    %c0_37 = arith.constant 0 : index
    %c0_38 = arith.constant 0 : index
    %57 = vector.load %arg9[%c0_37, %c0_38] : memref<1x384xf32, #tpu.memory_space<vmem>>, vector<1x384xf32>
    %58 = vector.broadcast %57 : vector<1x384xf32> to vector<8x384xf32>
    %59 = arith.addf %56, %58 : vector<8x384xf32>
    %60 = vector.extract_strided_slice %59 {offsets = [0, 0], sizes = [8, 128], strides = [1, 1]} : vector<8x384xf32> to vector<8x128xf32>
    %61 = arith.negf %60 : vector<8x128xf32>
    %62 = math.exp %61 : vector<8x128xf32>
    %cst_39 = arith.constant 1.000000e+00 : f32
    %63 = vector.broadcast %cst_39 : f32 to vector<8x128xf32>
    %64 = arith.addf %63, %62 : vector<8x128xf32>
    %65 = arith.divf %63, %64 : vector<8x128xf32>
    %66 = vector.extract_strided_slice %59 {offsets = [0, 128], sizes = [8, 128], strides = [1, 1]} : vector<8x384xf32> to vector<8x128xf32>
    %67 = arith.negf %66 : vector<8x128xf32>
    %68 = math.exp %67 : vector<8x128xf32>
    %cst_40 = arith.constant 1.000000e+00 : f32
    %69 = vector.broadcast %cst_40 : f32 to vector<8x128xf32>
    %70 = arith.addf %69, %68 : vector<8x128xf32>
    %71 = arith.divf %69, %70 : vector<8x128xf32>
    %72 = vector.extract_strided_slice %59 {offsets = [0, 256], sizes = [8, 128], strides = [1, 1]} : vector<8x384xf32> to vector<8x128xf32>
    %73 = math.tanh %72 : vector<8x128xf32>
    %74 = arith.mulf %71, %47 : vector<8x128xf32>
    %75 = arith.mulf %65, %73 : vector<8x128xf32>
    %76 = arith.addf %74, %75 : vector<8x128xf32>
    %77 = arith.negf %76 : vector<8x128xf32>
    %78 = math.exp %77 : vector<8x128xf32>
    %cst_41 = arith.constant 1.000000e+00 : f32
    %79 = vector.broadcast %cst_41 : f32 to vector<8x128xf32>
    %80 = arith.addf %79, %78 : vector<8x128xf32>
    %81 = arith.divf %79, %80 : vector<8x128xf32>
    %c1_42 = arith.constant 1 : index
    %c0_43 = arith.constant 0 : index
    %c0_44 = arith.constant 0 : index
    %82 = vector.load %arg10[%c1_42, %c0_43, %c0_44] : memref<2x8x128xf32, #tpu.memory_space<vmem>>, vector<1x8x128xf32>
    %83 = vector.shape_cast %82 : vector<1x8x128xf32> to vector<8x128xf32>
    %84 = vector.shape_cast %81 : vector<8x128xf32> to vector<1x8x128xf32>
    tpu.vector_store %arg10[%c1_42, %c0_43, %c0_44], %84 {strides = array<i32>} : memref<2x8x128xf32, #tpu.memory_space<vmem>>, vector<1x8x128xf32>,
    %c1_45 = arith.constant 1 : index
    %c0_46 = arith.constant 0 : index
    %c0_47 = arith.constant 0 : index
    %85 = vector.load %arg11[%c1_45, %c0_46, %c0_47] : memref<2x8x128xf32, #tpu.memory_space<vmem>>, vector<1x8x128xf32>
    %86 = vector.shape_cast %85 : vector<1x8x128xf32> to vector<8x128xf32>
    %87 = vector.shape_cast %76 : vector<8x128xf32> to vector<1x8x128xf32>
    tpu.vector_store %arg11[%c1_45, %c0_46, %c0_47], %87 {strides = array<i32>} : memref<2x8x128xf32, #tpu.memory_space<vmem>>, vector<1x8x128xf32>,
    return
  }
}

</mosaic_0001>

<bundles_post_ra>
// kernel: dsu_block_forward.1
= control target key start
LH: loop header
LB: loop body
LE: loop exit
PB: predicated region body
PF: predicated region fallthrough
CT: control target
= control target key end

     0   :  { %17 = vsyncpa [#allocation3], 0  ;;  %s1235_s0 = inlined_call_operand.vmem [shape: f32[8,128], index: 0, kind: input, shape index: {}]   ;;  %s1236_s1 = inlined_call_operand.vmem [shape: f32[2,8,128], index: 1, kind: input, shape index: {}]   ;;  %s1237_s2 = inlined_call_operand.vmem [shape: f32[2,8,128], index: 2, kind: input, shape index: {}]   ;;  %s1238_s3 = inlined_call_operand.vmem [shape: f32[256,10], index: 3, kind: input, shape index: {}]   ;;  %s1239_s4 = inlined_call_operand.vmem [shape: f32[1,10], index: 4, kind: input, shape index: {}]   ;;  %s1240_s5 = inlined_call_operand.vmem [shape: f32[10,384], index: 5, kind: input, shape index: {}]   ;;  %s1241_s6 = inlined_call_operand.vmem [shape: f32[1,384], index: 6, kind: input, shape index: {}]   ;;  %s1242_s7 = inlined_call_operand.vmem [shape: f32[32,384], index: 7, kind: input, shape index: {}]   ;;  %s1243_s8 = inlined_call_operand.vmem [shape: f32[32,384], index: 8, kind: input, shape index: {}]   ;;  %s1244_s9 = inlined_call_operand.vmem [shape: f32[1,384], index: 9, kind: input, shape index: {}]   ;;  %s1245_s10 = inlined_call_operand.hbm [shape: f32[2,8,128], index: 10, kind: output, shape index: {0}]   ;;  %s1246_s11 = inlined_call_operand.hbm [shape: f32[2,8,128], index: 11, kind: output, shape index: {1}]  }
   0x1   :  { %v73_v0 = vld [vmem:[%s1238_s3 + $0xf8] sm:$0xff]  ;;  %v72_v2 = vld [vmem:[%s1238_s3 + $0xf0] sm:$0xff]  ;;  %v71_v4 = vld [vmem:[%s1238_s3 + $0xe8] sm:$0xff] }
   0x2   :  { %v57_v1 = vld [vmem:[%s1238_s3 + $0x78] sm:$0xff]  ;;  %767 = vmatprep.subr.mxu0 %v73_v0  ;;  %v56_v3 = vld [vmem:[%s1238_s3 + $0x70] sm:$0xff]  ;;  %v55_v5 = vld [vmem:[%s1238_s3 + $0x68] sm:$0xff] }
   0x3   :  { %768 = vmatpush3.msra.mxu0 %v57_v1  ;;  %v70_v6 = vld [vmem:[%s1238_s3 + $0xe0] sm:$0xff]  ;;  %v69_v8 = vld [vmem:[%s1238_s3 + $0xd8] sm:$0xff]  ;;  %v68_v10 = vld [vmem:[%s1238_s3 + $0xd0] sm:$0xff] }
   0x4   :  { %769 = vmatprep.subr.mxu0 %v72_v2  ;;  %v54_v7 = vld [vmem:[%s1238_s3 + $0x60] sm:$0xff]  ;;  %v53_v9 = vld [vmem:[%s1238_s3 + $0x58] sm:$0xff]  ;;  %v52_v11 = vld [vmem:[%s1238_s3 + $0x50] sm:$0xff] }
   0x5   :  { %770 = vmatpush3.msra.mxu0 %v56_v3  ;;  %v67_v12 = vld [vmem:[%s1238_s3 + $0xc8] sm:$0xff]  ;;  %v41_v13 = vld [vmem:[%s1236_s1] sm:$0xff] }
   0x6   :  { %771 = vmatprep.subr.mxu0 %v71_v4  ;;  %v51_v14 = vld [vmem:[%s1238_s3 + $0x48] sm:$0xff]  ;;  %145 = vmatprep.mubr.f32.mxu0 %v41_v13 }
   0x7   :  { %772 = vmatpush3.msra.mxu0 %v55_v5 }
   0x8   :  { %773 = vmatprep.subr.mxu0 %v70_v6 }
   0x9   :  { %774 = vmatpush3.msra.mxu0 %v54_v7 }
   0xa   :  { %775 = vmatprep.subr.mxu0 %v69_v8 }
   0xb   :  { %776 = vmatpush3.msra.mxu0 %v53_v9 }
   0xc   :  { %777 = vmatprep.subr.mxu0 %v68_v10 }
   0xd   :  { %18 = vsyncpa [#allocation5], 0  ;;  %778 = vmatpush3.msra.mxu0 %v52_v11  ;;  %v66_v15 = vld [vmem:[%s1238_s3 + $0xc0] sm:$0xff]  ;;  %v65_v17 = vld [vmem:[%s1238_s3 + $0xb8] sm:$0xff]  ;;  %vm179_vm0 = vcmask 1041408   ;;  %v922_v38 = vmov 0.0   ;;  %v160_v8 = vlaneseq }
   0xe   :  { %779 = vmatprep.subr.mxu0 %v67_v12  ;;  %v50_v16 = vld [vmem:[%s1238_s3 + $0x40] sm:$0xff]  ;;  %v49_v18 = vld [vmem:[%s1238_s3 + $0x38] sm:$0xff]  ;;  %v64_v19 = vld [vmem:[%s1238_s3 + $0xb0] sm:$0xff]  ;;  %253 = vmatprep.mubr.f32.mxu1 %v922_v38  ;;  %vm923_vm1 = vmmov 0   ;;  %vm175_vm2 = vcmask 80896   ;;  %vm382_vm3 = vcmask 261120  }
   0xf   :  { %780 = vmatpush3.msra.mxu0 %v51_v14  ;;  %v48_v20 = vld [vmem:[%s1238_s3 + $0x30] sm:$0xff]  ;;  %v63_v21 = vld [vmem:[%s1238_s3 + $0xa8] sm:$0xff]  ;;  %v62_v23 = vld [vmem:[%s1238_s3 + $0xa0] sm:$0xff]  ;;  %v1210_v9 = vshrl.u32 %v160_v8, 7  ;;  %s924_s25 = smov [#allocation4]  }
  0x10   :  { %781 = vmatprep.subr.mxu0 %v66_v15  ;;  %v47_v22 = vld [vmem:[%s1238_s3 + $0x28] sm:$0xff]  ;;  %v46_v24 = vld [vmem:[%s1238_s3 + $0x20] sm:$0xff]  ;;  %v61_v25 = vld [vmem:[%s1238_s3 + $0x98] sm:$0xff]  ;;  %s734_s26 = sshll.u32 %s924_s25, 4  ;;  %s735_s26 = int_to_ptr.vmem [resolvable:$true] %s734_s26 }
  0x11   :  { %782 = vmatpush3.msra.mxu0 %v50_v16  ;;  %v45_v26 = vld [vmem:[%s1238_s3 + $0x18] sm:$0xff]  ;;  %v60_v27 = vld [vmem:[%s1238_s3 + $0x90] sm:$0xff]  ;;  %v59_v29 = vld [vmem:[%s1238_s3 + $0x88] sm:$0xff]  ;;  %v162_v10 = vsub.s32 0, %v1210_v9  ;;  %v166_v12 = vsub.s32 1, %v1210_v9  ;;  %p883_p1 = scmp.lt.s32.totalorder %s735_s26, %s735_s26 }
  0x12   :  { %783 = vmatprep.subr.mxu0 %v65_v17  ;;  %v44_v28 = vld [vmem:[%s1238_s3 + $0x10] sm:$0xff]  ;;  %v43_v30 = vld [vmem:[%s1238_s3 + $0x8] sm:$0xff]  ;;  %v58_v31 = vld [vmem:[%s1238_s3 + $0x80] sm:$0xff] }
  0x13   :  { %784 = vmatpush3.msra.mxu0 %v49_v18  ;;  %v42_v32 = vld [vmem:[%s1238_s3] sm:$0xff]  ;;  %v155_v35 = vld [vmem:[%s1240_s5 + $0x18] sm:$0x3]  ;;  %v153_v36 = vld [vmem:[%s1240_s5 + $0x8] sm:$0xff] }
  0x14   :  { %785 = vmatprep.subr.mxu0 %v64_v19  ;;  %v39_v33 = vld [vmem:[%s1235_s0] sm:$0xff]  ;;  %v157_v45 = vld [vmem:[%s1240_s5 + $0x28] sm:$0x3]  ;;  %v154_v46 = vld [vmem:[%s1240_s5 + $0x10] sm:$0xff] }
  0x15   :  { %786 = vmatpush3.msra.mxu0 %v48_v20  ;;  %v156_v34 = vld [vmem:[%s1240_s5 + $0x20] sm:$0x3]  ;;  %v380_v47 = vld [vmem:[%s1243_s8 + $0x50] sm:$0xff]  ;;  %v379_v48 = vld [vmem:[%s1243_s8 + $0x48] sm:$0xff] }
  0x16   :  { %787 = vmatprep.subr.mxu0 %v63_v21  ;;  %750 = vmatprep.subr.msk.mxu1 %vm179_vm0, %v156_v34  ;;  %v152_v37 = vld [vmem:[%s1240_s5] sm:$0xff]  ;;  %v377_v49 = vld [vmem:[%s1243_s8 + $0x38] sm:$0xff]  ;;  %v376_v50 = vld [vmem:[%s1243_s8 + $0x30] sm:$0xff] }
  0x17   :  { %788 = vmatpush3.msra.mxu0 %v47_v22  ;;  %751 = vmatpush1.msk.msra.mxu1 %vm179_vm0, %v155_v35  ;;  %v749_v40 = vld [vmem:[%s1239_s4] ss:$0 sm:$0xff]  ;;  %v373_v52 = vld [vmem:[%s1243_s8 + $0x18] sm:$0xff]  ;;  %v371_v53 = vld [vmem:[%s1243_s8 + $0x8] sm:$0xff] }
  0x18   :  { %789 = vmatprep.subr.mxu0 %v62_v23  ;;  %219 = vmatprep.subr.mxu1 %v153_v36  ;;  %v374_v51 = vld [vmem:[%s1243_s8 + $0x20] sm:$0xff]  ;;  %v759_v55 = vld [vmem:[%s1236_s1 + $0x8] sm:$0xff]  ;;  %v381_v56 = vld [vmem:[%s1243_s8 + $0x58] sm:$0xff]  ;;  %v170_v23 = vsub.s32 2, %v1210_v9 }
  0x19   :  { %790 = vmatpush3.msra.mxu0 %v46_v24  ;;  %220 = vmatpush1.msra.mxu1 %v152_v37  ;;  %v370_v54 = vld [vmem:[%s1243_s8] sm:$0xff]  ;;  %v375_v58 = vld [vmem:[%s1243_s8 + $0x28] sm:$0xff]  ;;  %v372_v59 = vld [vmem:[%s1243_s8 + $0x10] sm:$0xff] }
  0x1a   :  { %791 = vmatprep.subr.mxu0 %v61_v25  ;;  %815 = vmatprep.subr.mxu1 %v922_v38  ;;  %v378_v57 = vld [vmem:[%s1243_s8 + $0x40] sm:$0xff]  ;;  %v368_v60 = vld [vmem:[%s1242_s7 + $0x50] sm:$0xff]  ;;  %v367_v61 = vld [vmem:[%s1242_s7 + $0x48] sm:$0xff]  ;;  %s878_s8 = scalar_lea.vmem %s735_s26, 256 }
  0x1b   :  { %792 = vmatpush3.msra.mxu0 %v45_v26  ;;  %v369_v62 = vld [vmem:[%s1242_s7 + $0x58] sm:$0xff]  ;;  %v364_v0 = vld [vmem:[%s1242_s7 + $0x30] sm:$0xff]  ;;  %v366_v1 = vld [vmem:[%s1242_s7 + $0x40] sm:$0xff]  ;;  %p879_p0 = scmp.ne.s32.totalorder %s735_s26, %s878_s8  ;;  %p884_p2 = scmp.lt.s32.totalorder %s878_s8, %s878_s8 }
  0x1c   :  { %793 = vmatprep.subr.mxu0 %v60_v27  ;;  %v365_v63 = vld [vmem:[%s1242_s7 + $0x38] sm:$0xff]  ;;  %v362_v2 = vld [vmem:[%s1242_s7 + $0x20] sm:$0xff]  ;;  %v363_v4 = vld [vmem:[%s1242_s7 + $0x28] sm:$0xff] }
  0x1d   :  { %794 = vmatpush3.msra.mxu0 %v44_v28  ;;  %v361_v3 = vld [vmem:[%s1242_s7 + $0x18] sm:$0xff]  ;;  %v359_v5 = vld [vmem:[%s1242_s7 + $0x8] sm:$0xff]  ;;  %v358_v6 = vld [vmem:[%s1242_s7] sm:$0xff]  ;;  %p885_p3 = por %p884_p2, %p883_p1 }
  0x1e   :  { %795 = vmatprep.subr.mxu0 %v59_v29  ;;  %v360_v7 = vld [vmem:[%s1242_s7 + $0x10] sm:$0xff]  ;;  %v158_v11 = vld [vmem:[%s1241_s6] sm:$0x7] }
  0x1f   :  { %796 = vmatpush3.msra.mxu0 %v43_v30  ;;  %v163_v13 = vrot.slane %v158_v11, %v162_v10  ;;  %v167_v14 = vrot.slane %v158_v11, %v166_v12  ;;  %v171_v24 = vrot.slane %v158_v11, %v170_v23  ;;  %p886_p4 = pnand %p885_p3, %p879_p0 }
  0x20   :  { %797 = vmatprep.subr.mxu0 %v58_v31  ;;  %v40_v31 = vld [vmem:[%s1237_s2] sm:$0xff] }
  0x21   :  { %798 = vmatpush3.msra.mxu0 %v42_v32 }
  0x22   :  { %146 = vmatmul.mubr.f32.vlgmr.msra.gmra.mxu0 %v39_v33  ;;  %833 = vmatprep.subr.mxu0 %v922_v38 }
  0x23   :  { %841 = vmatprep.mubr.msk.f32.mxu0 %vm923_vm1, %v922_v38  ;;  %834 = vmatpush3.msra.mxu0 %v369_v62 }
  0x24   :  { %835 = vmatprep.subr.mxu0 %v922_v38 }
  0x25   :  { %836 = vmatpush3.msra.mxu0 %v366_v1 }
  0x26   :  { %837 = vmatprep.subr.mxu0 %v922_v38 }
  0x27   :  { %838 = vmatpush3.msra.mxu0 %v363_v4 }
  0x28   :  { %839 = vmatprep.subr.mxu0 %v922_v38 }
  0x29   :  { %840 = vmatpush3.msra.mxu0 %v360_v7 }
  0xe2   :  { %v799_v39 = vpop.f32.mrf.mxu0 }
  0xe4   :  { %v800_v41 = vpop.f32.mrf.mxu0 }
  0xe5   :  { %v801_v42 = vadd.f32 %v800_v41, %v799_v39 }
  0xe7   :  { %v148_v43 = vadd.f32 %v801_v42, %v749_v40 }
  0xe9   :  { %v151_v44 = vmax.f32 %v148_v43, 0.0 }
  0xeb   :  { %752 = vmatmul.mubr.msk.f32.vlgmr.msra.gmra.mxu1 %vm175_vm2, %v151_v44 }
  0xec   :  { %816 = vmatpush3.msk.msra.mxu1 %vm179_vm0, %v157_v45  ;;  %819 = vmatprep.mubr.msk.f32.mxu1 %vm923_vm1, %v922_v38  ;;  %v671_v45 = vld [vmem:[%s1244_s9] sm:$0x7] }
  0xed   :  { %817 = vmatprep.subr.mxu1 %v922_v38 }
  0xee   :  { %818 = vmatpush3.msra.mxu1 %v154_v46  ;;  %v676_v46 = vrot.slane %v671_v45, %v162_v10 }
  0xef   :  { %820 = vmatmul.mubr.msk.f32.vlgmr.msra.gmra.mxu1 %vm175_vm2, %v151_v44  ;;  %410 = vmatprep.subr.mxu1 %v380_v47 }
  0xf0   :  { %450 = vmatprep.mubr.f32.mxu1 %v922_v38  ;;  %411 = vmatpush1.msra.mxu1 %v379_v48 }
  0xf1   :  { %412 = vmatprep.subr.mxu1 %v377_v49 }
  0xf2   :  { %413 = vmatpush1.msra.mxu1 %v376_v50  ;;  %v680_v50 = vrot.slane %v671_v45, %v166_v12 }
  0xf3   :  { %414 = vmatprep.subr.mxu1 %v374_v51 }
  0xf4   :  { %415 = vmatpush1.msra.mxu1 %v373_v52 }
  0xf5   :  { %416 = vmatprep.subr.mxu1 %v371_v53 }
  0xf6   :  { %417 = vmatpush1.msra.mxu1 %v370_v54 }
  0xf7   :  { %760 = vmatmul.mubr.msk.f32.vlgmr.msra.gmra.mxu1 %vm382_vm3, %v759_v55  ;;  %822 = vmatprep.subr.mxu1 %v922_v38 }
  0xf8   :  { %823 = vmatpush3.msra.mxu1 %v381_v56  ;;  %830 = vmatprep.mubr.msk.f32.mxu1 %vm923_vm1, %v922_v38 }
  0xf9   :  { %824 = vmatprep.subr.mxu1 %v922_v38 }
  0xfa   :  { %825 = vmatpush3.msra.mxu1 %v378_v57 }
  0xfb   :  { %826 = vmatprep.subr.mxu1 %v922_v38 }
  0xfc   :  { %827 = vmatpush3.msra.mxu1 %v375_v58 }
  0xfd   :  { %828 = vmatprep.subr.mxu1 %v922_v38 }
  0xfe   :  { %829 = vmatpush3.msra.mxu1 %v372_v59  ;;  %v684_v59 = vrot.slane %v671_v45, %v170_v23 }
  0xff   :  { %831 = vmatmul.mubr.msk.f32.vlgmr.msra.gmra.mxu1 %vm382_vm3, %v759_v55  ;;  %554 = vmatprep.subr.mxu1 %v368_v60 }
 0x100   :  { %594 = vmatprep.mubr.f32.mxu1 %v922_v38  ;;  %555 = vmatpush1.msra.mxu1 %v367_v61 }
 0x101   :  { %556 = vmatprep.subr.mxu1 %v365_v63 }
 0x102   :  { %557 = vmatpush1.msra.mxu1 %v364_v0 }
 0x103   :  { %558 = vmatprep.subr.mxu1 %v362_v2  ;;  %v758_v2 = vld [vmem:[%s1237_s2 + $0x8] sm:$0xff] }
 0x104   :  { %559 = vmatpush1.msra.mxu1 %v361_v3 }
 0x105   :  { %560 = vmatprep.subr.mxu1 %v359_v5 }
 0x106   :  { %561 = vmatpush1.msra.mxu1 %v358_v6 }
 0x1ab   :  { %v255_v15 = vpop.f32.mrf.mxu1 }
 0x1ac   :  { %v256_v16 = vadd.f32 %v255_v15, %v163_v13 }
 0x1ad   :  { %v257_v17 = vpop.f32.mrf.mxu1 }
 0x1ae   :  { %v755_v18 = vmul.f32 -1.442695, %v256_v16  ;;  %v258_v19 = vadd.f32 %v257_v17, %v167_v14 }
 0x1af   :  { %v326_v20 = vpop.f32.mrf.mxu1 }
 0x1b0   :  { %850 = vpow2.f32 %v755_v18  ;;  %v756_v21 = vmul.f32 -1.442695, %v258_v19  ;;  %v327_v26 = vadd.f32 %v326_v20, %v171_v24 }
 0x1b1   :  { %v821_v22 = vpop.f32.mrf.mxu1 }
 0x1b2   :  { %852 = vpow2.f32 %v756_v21 }
 0x1b7   :  { %v452_v41 = vpop.f32.mrf.mxu1 }
 0x1b9   :  { %v454_v42 = vpop.f32.mrf.mxu1 }
 0x1bd   :  { %v851_v25 = vpop.eup %850 }
 0x1be   :  { %v333_v27 = vadd.f32 1.0, %v851_v25 }
 0x1bf   :  { %v853_v28 = vpop.eup %852  ;;  %v523_v43 = vpop.f32.mrf.mxu1 }
 0x1c0   :  { %854 = vrcp.f32 %v333_v27  ;;  %v339_v29 = vadd.f32 1.0, %v853_v28 }
 0x1c1   :  { %856 = vtanh.f32 %v327_v26  ;;  %v832_v44 = vpop.f32.mrf.mxu1 }
 0x1c2   :  { %858 = vrcp.f32 %v339_v29 }
 0x1cd   :  { %v855_v30 = vpop.eup %854 }
 0x1ce   :  { %v857_v32 = vpop.eup %856 }
 0x1cf   :  { %v859_v33 = vpop.eup %858  ;;  %v344_v35 = vmul.f32 %v857_v32, %v855_v30 }
 0x1d0   :  { %v343_v34 = vmul.f32 %v859_v33, %v40_v31 }
 0x1d2   :  { %v345_v36 = vadd.f32 %v344_v35, %v343_v34 }
 0x1d4   :  { %v757_v37 = vmul.f32 -1.442695, %v345_v36  ;;  %353 = vst [vmem:[#allocation4] sm:$0xff] %v345_v36 }
 0x1d6   :  { %860 = vpow2.f32 %v757_v37 }
 0x1e3   :  { %v861_v38 = vpop.eup %860 }
 0x1e4   :  { %v349_v39 = vadd.f32 1.0, %v861_v38 }
 0x1e6   :  { %862 = vrcp.f32 %v349_v39 }
 0x1f3   :  { %v863_v40 = vpop.eup %862 }
 0x1f4   :  { %352 = vst [vmem:[#allocation2] sm:$0xff] %v863_v40  ;;  %762 = vmatmul.mubr.msk.f32.vlgmr.msra.gmra.mxu1 %vm382_vm3, %v863_v40  ;;  %842 = vmatmul.mubr.msk.f32.vlgmr.msra.gmra.mxu0 %vm382_vm3, %v863_v40 }
 0x2b4   :  { %v596_v47 = vpop.f32.mrf.mxu1  ;;  %v667_v48 = vpop.f32.mrf.mxu0 }
 0x2b5   :  { %v597_v49 = vadd.f32 %v596_v47, %v452_v41  ;;  %v668_v58 = vadd.f32 %v667_v48, %v523_v43 }
 0x2b6   :  { %v598_v51 = vpop.f32.mrf.mxu1  ;;  %v843_v52 = vpop.f32.mrf.mxu0 }
 0x2b7   :  { %v688_v53 = vadd.f32 %v676_v46, %v597_v49  ;;  %v599_v54 = vadd.f32 %v598_v51, %v454_v42  ;;  %v690_v61 = vadd.f32 %v684_v59, %v668_v58 }
 0x2b9   :  { %v764_v55 = vmul.f32 -1.442695, %v688_v53  ;;  %v689_v56 = vadd.f32 %v680_v50, %v599_v54 }
 0x2bb   :  { %864 = vpow2.f32 %v764_v55  ;;  %v765_v57 = vmul.f32 -1.442695, %v689_v56 }
 0x2bd   :  { %866 = vpow2.f32 %v765_v57 }
 0x2c8   :  { %v865_v60 = vpop.eup %864 }
 0x2c9   :  { %v694_v62 = vadd.f32 1.0, %v865_v60 }
 0x2ca   :  { %v867_v63 = vpop.eup %866 }
 0x2cb   :  { %868 = vrcp.f32 %v694_v62  ;;  %v700_v0 = vadd.f32 1.0, %v867_v63 }
 0x2cc   :  { %870 = vtanh.f32 %v690_v61 }
 0x2cd   :  { %872 = vrcp.f32 %v700_v0 }
 0x2d8   :  { %v869_v1 = vpop.eup %868 }
 0x2d9   :  { %v871_v3 = vpop.eup %870 }
 0x2da   :  { %v873_v4 = vpop.eup %872  ;;  %v705_v5 = vmul.f32 %v871_v3, %v869_v1 }
 0x2db   :  { %v704_v6 = vmul.f32 %v873_v4, %v758_v2 }
 0x2dd   :  { %v706_v7 = vadd.f32 %v705_v5, %v704_v6 }
 0x2df   :  { %v766_v8 = vmul.f32 -1.442695, %v706_v7  ;;  %716 = vst [vmem:[#allocation4 + $0x8] sm:$0xff] %v706_v7 }
 0x2e0   :  { %889 = shalt.err (!%p886_p4)
}
 0x2e1   :  { %s925_s27 = smov 128   ;;  %s926_s28 = smov 8   ;;  %874 = vpow2.f32 %v766_v8 }
 0x2e2   :  { %740 = dma.vmem_to_hbm [thread:$0]  %s735_s26, 256, %s1246_s11, [#allocation5], %s925_s27, %s925_s27, %s926_s28  }
 0x2e3   :  { %s927_s30 = smov [#allocation2]  }
 0x2e4   :  { %s722_s12 = sshll.u32 %s927_s30, 4  ;;  %s723_s12 = int_to_ptr.vmem [resolvable:$true] %s722_s12 }
 0x2e5   :  { %s898_s3 = scalar_lea.vmem %s723_s12, 256  ;;  %p903_p6 = scmp.lt.s32.totalorder %s723_s12, %s723_s12 }
 0x2e6   :  { %p899_p5 = scmp.ne.s32.totalorder %s723_s12, %s898_s3  ;;  %p904_p7 = scmp.lt.s32.totalorder %s898_s3, %s898_s3 }
 0x2e8   :  { %p905_p8 = por %p904_p7, %p903_p6 }
 0x2ea   :  { %p906_p9 = pnand %p905_p8, %p899_p5 }
 0x2ee   :  { %v875_v9 = vpop.eup %874 }
 0x2ef   :  { %v710_v10 = vadd.f32 1.0, %v875_v9 }
 0x2f1   :  { %876 = vrcp.f32 %v710_v10 }
 0x2fe   :  { %v877_v11 = vpop.eup %876 }
 0x2ff   :  { %714 = vst [vmem:[#allocation2 + $0x8] sm:$0xff] %v877_v11 }
 0x300   :  { %909 = shalt.err (!%p906_p9)
}
 0x301   :  { %728 = dma.vmem_to_hbm [thread:$0]  %s723_s12, 256, %s1245_s10, [#allocation3], %s925_s27, %s925_s27, %s926_s28  }
 0x302   :  { %918 = dma.done.wait [#allocation3], 256  }
 0x303   :  { %919 = vsyncadd [#allocation3], 4294967040 }
 0x304   :  { %920 = dma.done.wait [#allocation5], 256  }
 0x305   :  { %921 = vsyncadd [#allocation5], 4294967040 }
 0x306   :  { %747 = vsyncpa [#allocation3], 1 }
 0x307   :  { %748 = vsyncpa [#allocation5], 1 }

</bundles_post_ra>
